<compile_context>
chip_gen: v7x
topology: tpu7x:2x2x1
jax: 0.10.0
libtpu: 0.0.40
codegen_flags: <defaults>
</compile_context>

<pallas_src>
import functools
import math

import jax
import jax.numpy as jnp
from jax import lax
from jax.experimental import pallas as pl
from jax.experimental.pallas import tpu as pltpu


_MAX_ROW_TILE = 512          # rows per grid step (multiple of sublane packing)
_MAX_OUT_TILE = 512          # output lanes per grid step (multiple of 128)
_OUT_CHUNK = 128             # output lanes de-interleaved per inner iteration
_COL_TILE_THRESHOLD = 128    # tile the time axis once n_out >= 128


def _round_up(x: int, m: int) -> int:
    return ((x + m - 1) // m) * m


def _sublane_multiple(dtype) -> int:
    # 8 for f32, 16 for bf16, 32 for int8 (sub-32-bit packs along sublanes).
    itemsize = jnp.dtype(dtype).itemsize
    return max(8, 8 * (4 // max(1, itemsize)))


def _tpu_vmem_capacity_bytes() -> int:
    try:
        info = pltpu.get_tpu_info()
        cap = getattr(info, "vmem_capacity_bytes", None)
        if cap:
            return int(cap)
    except Exception:
        pass
    return 64 * 1024 * 1024      # conservative: v7x per-TensorCore VMEM


def _num_tensorcores() -> int:
    try:
        info = pltpu.get_tpu_info()
        for name in ("num_cores", "num_tensorcores", "tensorcore_count",
                     "cores_per_chip"):
            v = getattr(info, name, None)
            if isinstance(v, int) and 0 < v <= 8:
                return v
    except Exception:
        pass
    try:
        kind = jax.devices()[0].device_kind.lower()
        if "v7" in kind:
            return 2
    except Exception:
        pass
    return 1


def _bytes_per_row(in_cols: int, out_cols: int, chunk_out: int, d: int,
                   itemsize: int, sub: int, n_buf: int = 2) -> int:
    """Per-row VMEM bytes: double-buffered lane-padded tiles + de-interleave scratch."""
    tiles = n_buf * (_round_up(in_cols, 128) + _round_up(out_cols, 128)) * itemsize
    # One chunk's (rows, chunk_out, d) intermediate: the d-minor dim can be
    # lane-padded to 128 by the relayout, plus the loaded window itself.
    scratch = (_round_up(chunk_out, sub) * _round_up(d, 128)
               + chunk_out * d) * itemsize
    return tiles + scratch


def _pick_row_tile(n_rows: int, bytes_per_row: int, sub: int,
                   budget: int, num_tc: int) -> int:
    """Largest row tile that fits the VMEM budget; split across TCs only if >1 TC."""
    if n_rows <= sub:
        return n_rows                       # full-extent block (always legal)
    budget_rows = max(sub, (budget // max(1, bytes_per_row)) // sub * sub)
    cap = _round_up(n_rows, sub)
    if num_tc >= 2:
        # Keep >= num_tc grid steps on the (parallel) row axis so megacore can
        # shard it.  On single-TC chips this would only add per-step overhead.
        cap = max(sub, min(cap, _round_up(pl.cdiv(n_rows, num_tc), sub)))
    return max(sub, min(budget_rows, cap, _MAX_ROW_TILE))


def _make_select_kernel(start: int, r: int, d: int, out_block: int,
                        n_chunks: int, chunk: int):
    """out[p, i] = x[p, start + i*d + r], processed in `chunk`-wide lane chunks."""

    def select_chunk(x_ref, o_ref, col0, out0, width):
        rows = x_ref.shape[0]
        win = x_ref[:, pl.ds(col0, width * d)]          # contiguous window
        sel = win.reshape(rows, width, d)[:, :, r]      # keep phase r of each group
        o_ref[:, pl.ds(out0, width)] = sel

    def kernel(x_ref, o_ref):
        if n_chunks == 1:
            select_chunk(x_ref, o_ref, start, 0, out_block)
        else:
            def body(c, carry):
                col0 = pl.multiple_of(c * (chunk * d), 128)
                out0 = pl.multiple_of(c * chunk, 128)
                select_chunk(x_ref, o_ref, start + col0, out0, chunk)
                return carry
            # Not unrolled: bounds the de-interleave intermediate to one chunk.
            lax.fori_loop(0, n_chunks, body, 0)

    return kernel


def downsample(x: jax.Array, offset: int = 0, d: int = 8) -> jax.Array:
    """Functional equivalent of Downsample(offset, d).forward(x)."""
    if offset < 0:
        raise ValueError(f"Offset must be positive, not {offset}")
    if d < 2:
        raise ValueError(f"You must decimate by at least a factor of 2, not {d}")

    B, C, IQ, N = x.shape
    # Mirrors the torch module (float formula + arange length).
    n_symbols = (N - 2 * offset + 1) / d - 1
    n_out = max(0, math.ceil(n_symbols))
    if n_out == 0 or B * C * IQ == 0:
        return jnp.zeros((B, C, IQ, n_out), dtype=x.dtype)

    R = B * C * IQ
    xf = x.reshape(R, N)
    itemsize = jnp.dtype(x.dtype).itemsize
    sub = _sublane_multiple(x.dtype)
    cap = _tpu_vmem_capacity_bytes()
    num_tc = _num_tensorcores()
    # Tile budget: generous on 128 MiB-VMEM chips, scaled down on v7x (64 MiB).
    budget = min(40 * 1024 * 1024, (cap * 35) // 100)

    a, r = divmod(offset, d)        # offset = a*d + r,  0 <= r < d
    n_cols = N
    fused_input_slice = False

    use_col_tiling = n_out >= _COL_TILE_THRESHOLD
    if use_col_tiling:
        if a > 0:
            # Fold the whole-group part of the offset with a wrapper slice and
            # let XLA fuse it into the Pallas input read (no extra HBM pass).
            xf = xf[:, a * d:]
            n_cols = N - a * d
            a = 0
            fused_input_slice = True
        out_tile = min(_MAX_OUT_TILE, 128 * pl.cdiv(n_out, 128))
        col_tile = out_tile * d
        chunk = _OUT_CHUNK
        n_chunks = out_tile // chunk
        bpr = _bytes_per_row(col_tile, out_tile, chunk, d, itemsize, sub)
        row_tile = _pick_row_tile(R, bpr, sub, budget, num_tc)
        grid = (pl.cdiv(R, row_tile), pl.cdiv(n_out, out_tile))
        in_specs = [pl.BlockSpec((row_tile, col_tile), lambda i, j: (i, j))]
        out_specs = pl.BlockSpec((row_tile, out_tile), lambda i, j: (i, j))
        kernel = _make_select_kernel(0, r, d, out_tile, n_chunks, chunk)
        semantics = ("parallel", "parallel")
    else:
        chunk = n_out
        bpr = _bytes_per_row(n_cols, n_out, chunk, d, itemsize, sub)
        row_tile = _pick_row_tile(R, bpr, sub, budget, num_tc)
        grid = (pl.cdiv(R, row_tile),)
        in_specs = [pl.BlockSpec((row_tile, n_cols), lambda i: (i, 0))]
        out_specs = pl.BlockSpec((row_tile, n_out), lambda i: (i, 0))
        kernel = _make_select_kernel(a * d, r, d, n_out, 1, chunk)
        semantics = ("parallel",)

    # Explicit scoped-VMEM limit sized from the actual tiles (+headroom) so the
    # same tiling compiles on v5e (16 MiB default) / v6e / v7x.
    est_vmem = row_tile * bpr
    vmem_limit = max(32 * 1024 * 1024, est_vmem + est_vmem // 3 + (8 << 20))
    vmem_limit = min(vmem_limit, (cap * 3) // 4)

    params = dict(dimension_semantics=semantics,
                  vmem_limit_bytes=int(vmem_limit))
    if fused_input_slice:
        params["allow_input_fusion"] = [True]
    try:
        cparams = pltpu.CompilerParams(**params)
    except TypeError:
        params.pop("allow_input_fusion", None)
        cparams = pltpu.CompilerParams(**params)

    cost = pl.CostEstimate(flops=0, transcendentals=0,
                           bytes_accessed=(R * N + R * n_out) * itemsize)

    out_flat = pl.pallas_call(
        kernel,
        out_shape=jax.ShapeDtypeStruct((R, n_out), x.dtype),
        grid_spec=pltpu.PrefetchScalarGridSpec(
            num_scalar_prefetch=0,
            grid=grid,
            in_specs=in_specs,
            out_specs=out_specs,
        ),
        compiler_params=cparams,
        cost_estimate=cost,
    )(xf)

    return out_flat.reshape(B, C, IQ, n_out)


if __name__ == "__main__":
    key = jax.random.PRNGKey(0)

    def reference(x, offset, d):
        N = x.shape[3]
        n_symbols = (N - 2 * offset + 1) / d - 1
        n_out = max(0, math.ceil(n_symbols))
        idx = jnp.arange(n_out) * d + offset
        return x[:, :, :, idx]

    # (B, C, IQ, N, offset, d, dtype)
    cases = [
        (2, 4, 2, 64,   0, 8, jnp.float32),   # short signal: un-tiled time axis
        (1, 5, 2, 1000, 9, 4, jnp.float32),   # ragged rows, offset >= d, col-tiled
        (2, 4, 2, 8192, 0, 8, jnp.float32),   # col-tiled, exact tiles
        (2, 4, 2, 8192, 3, 8, jnp.float32),   # col-tiled, phase r > 0, ragged tail
        (2, 4, 2, 8000, 0, 8, jnp.float32),   # col-tiled, ragged input blocks
        (2, 2, 2, 512,  0, 4, jnp.bfloat16),  # bf16 (sublane multiple 16)
        (1, 2, 2, 200,  9, 4, jnp.float32),   # un-tiled path with offset >= d
    ]
    keys = jax.random.split(key, len(cases))
    for k, (B, C, IQ, N, offset, d, dtype) in zip(keys, cases):
        x = jax.random.normal(k, (B, C, IQ, N), dtype=dtype)
        fn = jax.jit(functools.partial(downsample, offset=offset, d=d))
        out = jax.block_until_ready(fn(x))
        ref = reference(x, offset, d)
        assert out.shape == ref.shape, (out.shape, ref.shape)
        assert jnp.array_equal(out, ref), (
            f"Pallas downsample mismatch for case {(B, C, IQ, N, offset, d, dtype)}")

    print("KERNEL_OK")
</pallas_src>

<mosaic_0001>
module attributes {stable_mosaic.version = 11 : i64} {
  func.func @kernel(%arg0: i32, %arg1: memref<16x64xf32, #tpu.memory_space<vmem>>, %arg2: memref<16x8xf32, #tpu.memory_space<vmem>>) attributes {dimension_semantics = [#tpu.dimension_semantics<parallel>], iteration_bounds = array<i64: 1>, scalar_prefetch = 0 : i64, scratch_operands = 0 : i64, tpu.core_type = #tpu.core_type<tc>, window_params = [{transform_indices = @transform_0, window_bounds = array<i64: 16, 64>}, {transform_indices = @transform_1, window_bounds = array<i64: 16, 8>}]} {
    %c0 = arith.constant 0 : index
    %c0_0 = arith.constant 0 : index
    %0 = vector.load %arg1[%c0, %c0_0] : memref<16x64xf32, #tpu.memory_space<vmem>>, vector<16x64xf32>
    %1 = vector.shape_cast %0 : vector<16x64xf32> to vector<16x8x8xf32>
    %2 = vector.extract_strided_slice %1 {offsets = [0, 0, 0], sizes = [16, 8, 1], strides = [1, 1, 1]} : vector<16x8x8xf32> to vector<16x8x1xf32>
    %3 = vector.shape_cast %2 : vector<16x8x1xf32> to vector<16x8xf32>
    %c0_1 = arith.constant 0 : index
    %c0_2 = arith.constant 0 : index
    %4 = vector.load %arg2[%c0_1, %c0_2] : memref<16x8xf32, #tpu.memory_space<vmem>>, vector<16x8xf32>
    tpu.vector_store %arg2[%c0_1, %c0_2], %3 {strides = array<i32>} : memref<16x8xf32, #tpu.memory_space<vmem>>, vector<16x8xf32>,
    return
  }
  func.func @transform_0(%arg0: i32) -> (i32, i32) {
    %c0_i32 = arith.constant 0 : i32
    %c0_i32_0 = arith.constant 0 : i32
    return %arg0, %c0_i32 : i32, i32
  }
  func.func @transform_1(%arg0: i32) -> (i32, i32) {
    %c0_i32 = arith.constant 0 : i32
    %c0_i32_0 = arith.constant 0 : i32
    return %arg0, %c0_i32 : i32, i32
  }
}

</mosaic_0001>

<bundles_post_ra>
// kernel: downsample.1
= control target key start
LH: loop header
LB: loop body
LE: loop exit
PB: predicated region body
PF: predicated region fallthrough
CT: control target
= control target key end

     0   :  { %6 = vsyncpa [#allocation3], 0  ;;  %s728_s0 = inlined_call_operand.hbm [shape: f32[16,64], index: 0, kind: input, shape index: {}]   ;;  %s729_s1 = inlined_call_operand.hbm [shape: f32[16,8], index: 1, kind: output, shape index: {}]  }
   0x1   :  { %7 = vsyncpa [#allocation4], 0  ;;  %s578_s6 = smov [#allocation2]   ;;  %s530_s10 = scalar_lea.hbm %s728_s0, 256 }
   0x2   :  { %s13_s7 = sshll.u32 %s578_s6, 4  ;;  %p531_p0 = scmp.ne.s32.totalorder %s728_s0, %s530_s10  ;;  %s14_s7 = int_to_ptr.vmem [resolvable:$true] %s13_s7 }
   0x3   :  { %p534_p1 = scmp.lt.u32.totalorder %s530_s10, %s728_s0 }
   0x5   :  { %p536_p2 = pnand %p534_p1, %p531_p0 }
   0x7   :  { %539 = shalt.err (!%p536_p2)
}
   0x8   :  { %s540_s15 = scalar_lea.vmem %s14_s7, 256  ;;  %p545_p4 = scmp.lt.s32.totalorder %s14_s7, %s14_s7 }
   0x9   :  { %p541_p3 = scmp.ne.s32.totalorder %s14_s7, %s540_s15  ;;  %p546_p5 = scmp.lt.s32.totalorder %s540_s15, %s540_s15 }
   0xb   :  { %p547_p6 = por %p546_p5, %p545_p4 }
   0xd   :  { %p548_p7 = pnand %p547_p6, %p541_p3 }
   0xf   :  { %551 = shalt.err (!%p548_p7)
}
  0x10   :  { %s579_s16 = smov 128   ;;  %s580_s17 = smov 8  }
  0x11   :  { %19 = dma.hbm_to_vmem [thread:$0]  %s728_s0, 256, %s14_s7, [#allocation3], %s579_s16, %s579_s16, %s580_s17  }
  0x12   :  { %574 = dma.done.wait [#allocation3], 256  }
  0x13   :  { %575 = vsyncadd [#allocation3], 4294967040  ;;  %v617_v0 = vld [vmem:[#allocation2] sm:$0xff]  ;;  %s581_s20 = smov 112   ;;  %s582_s21 = smov 120   ;;  %v621_v1 = vld [vmem:[#allocation2 + $0x8] sm:$0xff]  ;;  %v74_v3 = vlaneseq }
  0x14   :  { %33 = vrot.lane.b32.xlu1 %v617_v0, %s581_s20  ;;  %27 = vrot.lane.b32.xlu0 %v617_v0, %s582_s21  ;;  %s583_s22 = smov 104   ;;  %s584_s0 = smov 96   ;;  %v586_v2 = vmov 0   ;;  %v589_v15 = vmov 1983009808   ;;  %vm471_vm0 = vcmask 1041409  }
  0x15   :  { %s585_s23 = smov 88   ;;  %529 = vset.pattern.permute.xlu1 %v586_v2  ;;  %528 = vset.pattern.permute.xlu0 %v586_v2  ;;  %s587_s24 = smov 80   ;;  %v75_v4 = vshrl.u32 %v74_v3, 7  ;;  %v406_v5 = vand.u32 127, %v74_v3  ;;  %v72_v16 = vunpack.c.l.s4 %v589_v15  ;;  %v590_v20 = vmov 1934713408  }
  0x16   :  { %s588_s25 = smov 72   ;;  %v136_v21 = vunpack.c.l.s4 %v590_v20  ;;  %vm473_vm1 = vcmask 1042434   ;;  %vm475_vm2 = vcmask 1043459   ;;  %vm477_vm3 = vcmask 1044484   ;;  %s591_s26 = smov [#allocation5]  }
  0x17   :  { %v635_v6 = vsub.s32 %v406_v5, %v75_v4  ;;  %v73_v19 = vunpack.c.0.s8 %v72_v16  ;;  %vm479_vm4 = vcmask 1045509   ;;  %vm481_vm5 = vcmask 1046534   ;;  %s502_s27 = sshll.u32 %s591_s26, 4  ;;  %s503_s27 = int_to_ptr.vmem [resolvable:$true] %s502_s27 }
  0x18   :  { %35 = vrot.lane.b32.xlu1 %v621_v1, %s581_s20  ;;  %29 = vrot.lane.b32.xlu0 %v621_v1, %s582_s21  ;;  %v137_v28 = vunpack.c.0.s8 %v136_v21  ;;  %vm483_vm6 = vcmask 1047559   ;;  %vm494_vm7 = vcmask 64512   ;;  %s552_s28 = scalar_lea.vmem %s503_s27, 256  ;;  %p557_p9 = scmp.lt.s32.totalorder %s503_s27, %s503_s27 }
  0x19   :  { %v76_v25 = vsub.s32 %v73_v19, %v75_v4  ;;  %p553_p8 = scmp.ne.s32.totalorder %s503_s27, %s552_s28  ;;  %p558_p10 = scmp.lt.s32.totalorder %s552_s28, %s552_s28 }
  0x1a   :  { %v663_v41 = vsub.s32 %v137_v28, %v75_v4 }
  0x1b   :  { %p559_p11 = por %p558_p10, %p557_p9 }
  0x1c   :  { %41 = vrot.lane.b32.xlu1 %v621_v1, %s583_s22  ;;  %39 = vrot.lane.b32.xlu0 %v617_v0, %s583_s22 }
  0x1d   :  { %p560_p12 = pnand %p559_p11, %p553_p8 }
  0x20   :  { %47 = vrot.lane.b32.xlu1 %v621_v1, %s584_s0  ;;  %45 = vrot.lane.b32.xlu0 %v617_v0, %s584_s0 }
  0x24   :  { %53 = vrot.lane.b32.xlu1 %v621_v1, %s585_s23  ;;  %51 = vrot.lane.b32.xlu0 %v617_v0, %s585_s23 }
  0x28   :  { %59 = vrot.lane.b32.xlu1 %v621_v1, %s587_s24  ;;  %57 = vrot.lane.b32.xlu0 %v617_v0, %s587_s24 }
  0x2c   :  { %65 = vrot.lane.b32.xlu1 %v621_v1, %s588_s25  ;;  %63 = vrot.lane.b32.xlu0 %v617_v0, %s588_s25 }
  0x86   :  { %v637_v7 = vpop.permute.xlu1 %33  ;;  %v639_v8 = vpop.permute.xlu0 %27 }
  0x87   :  { %v69_v26 = vcombine.low %v617_v0, %v637_v7  ;;  %v70_v3 = vcombine.high %v617_v0, %v637_v7 }
  0x89   :  { %v77_v37 = vrot.slane %v69_v26, %v76_v25  ;;  %v84_v0 = vrot.slane %v70_v3, %v76_v25 }
  0x8a   :  { %v641_v9 = vpop.permute.xlu1 %35  ;;  %v643_v10 = vpop.permute.xlu0 %29 }
  0x8b   :  { %v205_v27 = vcombine.low %v621_v1, %v641_v9  ;;  %v206_v51 = vcombine.high %v621_v1, %v641_v9 }
  0x8d   :  { %v213_v38 = vrot.slane %v205_v27, %v76_v25 }
  0x8e   :  { %v645_v11 = vpop.permute.xlu1 %41  ;;  %v647_v12 = vpop.permute.xlu0 %39 }
  0x8f   :  { %v85_v22 = vcombine.low %v639_v8, %v647_v12  ;;  %v221_v29 = vcombine.low %v643_v10, %v645_v11  ;;  %v222_v59 = vcombine.high %v643_v10, %v645_v11  ;;  %v86_v61 = vcombine.high %v639_v8, %v647_v12 }
  0x90   :  { %v220_v12 = vrot.slane %v206_v51, %v76_v25 }
  0x91   :  { %v93_v30 = vrot.slane %v85_v22, %v76_v25  ;;  %v229_v42 = vrot.slane %v221_v29, %v76_v25  ;;  %v236_v15 = vrot.slane %v222_v59, %v76_v25 }
  0x92   :  { %v649_v13 = vpop.permute.xlu1 %47  ;;  %v651_v14 = vpop.permute.xlu0 %45 }
  0x93   :  { %v133_v43 = vcombine.low %v77_v37, %v93_v30  ;;  %v269_v48 = vcombine.low %v213_v38, %v229_v42  ;;  %v270_v60 = vcombine.high %v213_v38, %v229_v42  ;;  %v134_v62 = vcombine.high %v77_v37, %v93_v30 }
  0x94   :  { %v285_v22 = vcombine.low %v220_v12, %v236_v15 }
  0x95   :  { %v141_v49 = vrot.slane %v133_v43, %v663_v41  ;;  %v277_v2 = vrot.slane %v269_v48, %v663_v41 }
  0x96   :  { %v54_v17 = vpop.permute.xlu1 %53  ;;  %v52_v18 = vpop.permute.xlu0 %51 }
  0x9a   :  { %v60_v23 = vpop.permute.xlu1 %59  ;;  %v58_v24 = vpop.permute.xlu0 %57 }
  0x9b   :  { %v237_v31 = vcombine.low %v649_v13, %v60_v23  ;;  %v101_v32 = vcombine.low %v651_v14, %v58_v24  ;;  %v238_v63 = vcombine.high %v649_v13, %v60_v23  ;;  %v102_v1 = vcombine.high %v651_v14, %v58_v24 }
  0x9c   :  { %v100_v13 = vrot.slane %v86_v61, %v76_v25  ;;  %v284_v14 = vrot.slane %v270_v60, %v663_v41 }
  0x9d   :  { %v245_v44 = vrot.slane %v237_v31, %v76_v25  ;;  %v109_v45 = vrot.slane %v101_v32, %v76_v25  ;;  %v252_v16 = vrot.slane %v238_v63, %v76_v25 }
  0x9e   :  { %v66_v33 = vpop.permute.xlu1 %65  ;;  %v64_v34 = vpop.permute.xlu0 %63  ;;  %v149_v23 = vcombine.low %v84_v0, %v100_v13 }
  0x9f   :  { %v253_v35 = vcombine.low %v54_v17, %v66_v33  ;;  %v117_v36 = vcombine.low %v52_v18, %v64_v34  ;;  %v254_v52 = vcombine.high %v54_v17, %v66_v33  ;;  %v118_v54 = vcombine.high %v52_v18, %v64_v34 }
  0xa0   :  { %v116_v17 = vrot.slane %v102_v1, %v76_v25  ;;  %v148_v18 = vrot.slane %v134_v62, %v663_v41  ;;  %v157_v29 = vrot.slane %v149_v23, %v663_v41  ;;  %v286_v34 = vcombine.high %v220_v12, %v236_v15 }
  0xa1   :  { %v261_v39 = vrot.slane %v253_v35, %v76_v25  ;;  %v125_v40 = vrot.slane %v117_v36, %v76_v25  ;;  %v268_v4 = vrot.slane %v254_v52, %v76_v25  ;;  %v132_v5 = vrot.slane %v118_v54, %v76_v25 }
  0xa2   :  { %v293_v25 = vrot.slane %v285_v22, %v663_v41  ;;  %v150_v35 = vcombine.high %v84_v0, %v100_v13  ;;  %v300_v42 = vrot.slane %v286_v34, %v663_v41 }
  0xa3   :  { %v301_v46 = vcombine.low %v245_v44, %v261_v39  ;;  %v165_v47 = vcombine.low %v109_v45, %v125_v40  ;;  %v302_v53 = vcombine.high %v245_v44, %v261_v39  ;;  %v166_v55 = vcombine.high %v109_v45, %v125_v40 }
  0xa4   :  { %v317_v7 = vcombine.low %v252_v16, %v268_v4  ;;  %v181_v19 = vcombine.low %v116_v17, %v132_v5  ;;  %v318_v30 = vcombine.high %v252_v16, %v268_v4  ;;  %v182_v31 = vcombine.high %v116_v17, %v132_v5 }
  0xa5   :  { %v173_v50 = vrot.slane %v165_v47, %v663_v41  ;;  %v309_v58 = vrot.slane %v301_v46, %v663_v41  ;;  %v180_v11 = vrot.slane %v166_v55, %v663_v41  ;;  %v316_v8 = vrot.slane %v302_v53, %v663_v41 }
  0xa6   :  { %v189_v27 = vrot.slane %v181_v19, %v663_v41  ;;  %v325_v28 = vrot.slane %v317_v7, %v663_v41  ;;  %v196_v38 = vrot.slane %v182_v31, %v663_v41  ;;  %v332_v39 = vrot.slane %v318_v30, %v663_v41 }
  0xa7   :  { %v198_v56 = vcombine.high %v141_v49, %v173_v50  ;;  %v197_v57 = vcombine.low %v141_v49, %v173_v50  ;;  %v333_v9 = vcombine.low %v277_v2, %v309_v58  ;;  %v334_v10 = vcombine.high %v277_v2, %v309_v58 }
  0xa8   :  { %v199_v20 = vcombine.low %v148_v18, %v180_v11  ;;  %v335_v21 = vcombine.low %v284_v14, %v316_v8  ;;  %v200_v24 = vcombine.high %v148_v18, %v180_v11  ;;  %v336_v26 = vcombine.high %v284_v14, %v316_v8 }
  0xa9   :  { %361 = vperm.xlu1 %529, %v198_v56   ;;  %358 = vperm.xlu0 %528, %v197_v57   ;;  %v201_v32 = vcombine.low %v157_v29, %v189_v27  ;;  %v337_v33 = vcombine.low %v293_v25, %v325_v28  ;;  %v202_v36 = vcombine.high %v157_v29, %v189_v27 }
  0xaa   :  { %v338_v37 = vcombine.high %v293_v25, %v325_v28  ;;  %v164_v40 = vrot.slane %v150_v35, %v663_v41  ;;  %v339_v44 = vcombine.low %v300_v42, %v332_v39  ;;  %v340_v46 = vcombine.high %v300_v42, %v332_v39 }
  0xac   :  { %v203_v43 = vcombine.low %v164_v40, %v196_v38  ;;  %v204_v45 = vcombine.high %v164_v40, %v196_v38 }
  0xad   :  { %382 = vperm.xlu1 %529, %v333_v9   ;;  %385 = vperm.xlu0 %528, %v334_v10  }
  0xb1   :  { %364 = vperm.xlu1 %529, %v199_v20   ;;  %388 = vperm.xlu0 %528, %v335_v21  }
  0xb5   :  { %367 = vperm.xlu1 %529, %v200_v24   ;;  %391 = vperm.xlu0 %528, %v336_v26  }
  0xb9   :  { %370 = vperm.xlu1 %529, %v201_v32   ;;  %394 = vperm.xlu0 %528, %v337_v33  }
  0xbd   :  { %373 = vperm.xlu1 %529, %v202_v36   ;;  %397 = vperm.xlu0 %528, %v338_v37  }
  0xc1   :  { %376 = vperm.xlu1 %529, %v203_v43   ;;  %400 = vperm.xlu0 %528, %v339_v44  }
  0xc5   :  { %379 = vperm.xlu1 %529, %v204_v45   ;;  %403 = vperm.xlu0 %528, %v340_v46  }
 0x128   :  { %v362_v47 = vpop.permute.xlu1 %361  ;;  %v359_v48 = vpop.permute.xlu0 %358 }
 0x129   :  { %v414_v58 = vrot.slane %v362_v47, %v635_v6  ;;  %v410_v59 = vrot.slane %v359_v48, %v635_v6 }
 0x12b   :  { %v472_v10 = vsel %vm471_vm0, %v414_v58, %v410_v59 }
 0x12c   :  { %v383_v49 = vpop.permute.xlu1 %382  ;;  %v386_v50 = vpop.permute.xlu0 %385 }
 0x12d   :  { %v442_v60 = vrot.slane %v383_v49, %v635_v6  ;;  %v446_v61 = vrot.slane %v386_v50, %v635_v6 }
 0x12f   :  { %v485_v11 = vsel %vm471_vm0, %v446_v61, %v442_v60 }
 0x130   :  { %v365_v51 = vpop.permute.xlu1 %364  ;;  %v389_v52 = vpop.permute.xlu0 %388 }
 0x131   :  { %v418_v62 = vrot.slane %v365_v51, %v635_v6  ;;  %v450_v63 = vrot.slane %v389_v52, %v635_v6 }
 0x133   :  { %v474_v15 = vsel %vm473_vm1, %v418_v62, %v472_v10  ;;  %v486_v13 = vsel %vm473_vm1, %v450_v63, %v485_v11 }
 0x134   :  { %v368_v53 = vpop.permute.xlu1 %367  ;;  %v392_v54 = vpop.permute.xlu0 %391 }
 0x135   :  { %v422_v1 = vrot.slane %v368_v53, %v635_v6  ;;  %v454_v2 = vrot.slane %v392_v54, %v635_v6 }
 0x137   :  { %v476_v17 = vsel %vm475_vm2, %v422_v1, %v474_v15  ;;  %v487_v18 = vsel %vm475_vm2, %v454_v2, %v486_v13 }
 0x138   :  { %v371_v55 = vpop.permute.xlu1 %370  ;;  %v395_v56 = vpop.permute.xlu0 %394 }
 0x139   :  { %v426_v3 = vrot.slane %v371_v55, %v635_v6  ;;  %v458_v4 = vrot.slane %v395_v56, %v635_v6 }
 0x13b   :  { %v478_v0 = vsel %vm477_vm3, %v426_v3, %v476_v17  ;;  %v488_v7 = vsel %vm477_vm3, %v458_v4, %v487_v18 }
 0x13c   :  { %v374_v57 = vpop.permute.xlu1 %373  ;;  %v398_v41 = vpop.permute.xlu0 %397 }
 0x13d   :  { %v430_v8 = vrot.slane %v374_v57, %v635_v6  ;;  %v462_v12 = vrot.slane %v398_v41, %v635_v6 }
 0x13f   :  { %v480_v21 = vsel %vm479_vm4, %v430_v8, %v478_v0  ;;  %v489_v22 = vsel %vm479_vm4, %v462_v12, %v488_v7 }
 0x140   :  { %v377_v5 = vpop.permute.xlu1 %376  ;;  %v401_v9 = vpop.permute.xlu0 %400 }
 0x141   :  { %v434_v14 = vrot.slane %v377_v5, %v635_v6  ;;  %v466_v16 = vrot.slane %v401_v9, %v635_v6 }
 0x143   :  { %v482_v26 = vsel %vm481_vm5, %v434_v14, %v480_v21  ;;  %v490_v27 = vsel %vm481_vm5, %v466_v16, %v489_v22 }
 0x144   :  { %v380_v19 = vpop.permute.xlu1 %379  ;;  %v404_v20 = vpop.permute.xlu0 %403 }
 0x145   :  { %v438_v23 = vrot.slane %v380_v19, %v635_v6  ;;  %v470_v24 = vrot.slane %v404_v20, %v635_v6 }
 0x147   :  { %v484_v28 = vsel %vm483_vm6, %v438_v23, %v482_v26  ;;  %v491_v29 = vsel %vm483_vm6, %v470_v24, %v490_v27 }
 0x148   :  { %495 = vst.msk [vmem:[#allocation5] sm:$0xff] %vm494_vm7, %v484_v28  ;;  %496 = vst.msk [vmem:[#allocation5 + $0x8] sm:$0xff] %vm494_vm7, %v491_v29 }
 0x149   :  { %563 = shalt.err (!%p560_p12)
}
 0x14a   :  { %s564_s2 = scalar_lea.hbm %s729_s1, 256 }
 0x14b   :  { %p565_p13 = scmp.ne.s32.totalorder %s729_s1, %s564_s2  ;;  %p568_p0 = scmp.lt.u32.totalorder %s564_s2, %s729_s1 }
 0x14d   :  { %p570_p1 = pnand %p568_p0, %p565_p13 }
 0x14f   :  { %573 = shalt.err (!%p570_p1)
}
 0x150   :  { %508 = dma.vmem_to_hbm [thread:$0]  %s503_s27, 256, %s729_s1, [#allocation4], %s579_s16, %s579_s16, %s580_s17  }
 0x151   :  { %576 = dma.done.wait [#allocation4], 256  }
 0x152   :  { %577 = vsyncadd [#allocation4], 4294967040 }
 0x153   :  { %512 = vsyncpa [#allocation3], 1 }
 0x154   :  { %513 = vsyncpa [#allocation4], 1 }

</bundles_post_ra>
